<compile_context>
chip_gen: v7x
topology: tpu7x:2x2x1
jax: 0.10.0
libtpu: 0.0.40
codegen_flags: <defaults>
</compile_context>

<pallas_src>
import jax
import jax.numpy as jnp
from jax.experimental import pallas as pl
from jax.experimental.pallas import tpu as pltpu


def _round_up(x, m):
    return ((x + m - 1) // m) * m


def mlp_kernel(xT_ref, w1T_ref, b1_ref, w2T_ref, b2_ref, w3_ref, b3_ref, o_ref):
    # Layer 1: h1T = W1^T @ xT -> (64, TM). bf16 MXU inputs, f32 accumulation.
    h1 = jnp.dot(w1T_ref[...], xT_ref[...], preferred_element_type=jnp.float32)
    h1 = jnp.maximum(h1 + b1_ref[...], 0.0)                 # (64,TM) + (64,1)
    # Layer 2: h2T = W2^T @ h1T -> (32, TM).
    h2 = jnp.dot(w2T_ref[...], h1.astype(jnp.bfloat16),
                 preferred_element_type=jnp.float32)
    h2 = jnp.maximum(h2 + b2_ref[...], 0.0)                 # (32,TM) + (32,1)
    # Layer 3: oT = w3 @ h2T -> (1, TM), f32 throughout. Lands lane-dense in
    # the output row; no transpose epilogue.
    out = jnp.dot(w3_ref[...], h2, preferred_element_type=jnp.float32)
    o_ref[...] = (out + b3_ref[0]).astype(o_ref.dtype)


def mlp_forward(x, params, *, tm_max=2048, vmem_limit_bytes=32 * 1024 * 1024):
    """x: [B, D] float32 -> [B, 1] float32 (bf16 matmuls, f32 accumulation)."""
    w1, b1, w2, b2, w3, b3 = params
    B, D = x.shape

    # ---- Tile sizing --------------------------------------------------------
    # TM (batch tile = lane/N dim of every matmul) must be a multiple of 128.
    # Clamp so the double-buffered (D, TM) bf16 input block stays well inside
    # the scoped-VMEM budget (v7x: 64 MiB physical / 32 MiB scoped default).
    input_budget = 8 * 1024 * 1024                           # 2 bufs of bf16 (D, TM)
    tm_cap = max(128, (input_budget // (2 * 2 * max(D, 1))) // 128 * 128)
    tm_max = max(128, min(tm_max, tm_cap))

    num_tiles = max(1, -(-B // tm_max))                      # ceil(B / tm_max)
    if B > 128 and num_tiles < 2:
        num_tiles = 2                                        # use both TCs on v7x
    tm = _round_up(max(1, -(-B // num_tiles)), 128)          # balanced tail tiles
    b_pad = tm * num_tiles

    # ---- Operand layout -----------------------------------------------------
    # Batch in lanes: stream x^T as lane-dense (D, TM) bf16 blocks.
    xT = jnp.pad(x, ((0, b_pad - B), (0, 0))).T.astype(jnp.bfloat16)   # (D, b_pad)
    w1T = w1.T.astype(jnp.bfloat16)                          # (64, D)
    w2T = w2.T.astype(jnp.bfloat16)                          # (32, 64)
    b1c = b1.reshape(-1, 1).astype(jnp.float32)              # (64, 1)
    b2c = b2.reshape(-1, 1).astype(jnp.float32)              # (32, 1)
    w3r = w3.reshape(1, -1).astype(jnp.float32)              # (1, 32)
    b3s = b3.reshape(1).astype(jnp.float32)                  # (1,) SMEM scalar

    # Weights/biases: full-array blocks with constant index_map -> VMEM-resident
    # across all grid steps.
    def resident(a):
        return pl.BlockSpec(a.shape, lambda i: (0,) * a.ndim)

    outT = pl.pallas_call(
        mlp_kernel,
        out_shape=jax.ShapeDtypeStruct((1, b_pad), jnp.float32),
        grid=(num_tiles,),
        in_specs=[
            pl.BlockSpec((D, tm), lambda i: (0, i)),         # streamed x^T tile
            resident(w1T), resident(b1c),
            resident(w2T), resident(b2c),
            resident(w3r),
            pl.BlockSpec(memory_space=pltpu.MemorySpace.SMEM),   # b3 scalar
        ],
        out_specs=pl.BlockSpec((1, tm), lambda i: (0, i)),   # lane-dense output row
        compiler_params=pltpu.CompilerParams(
            dimension_semantics=("parallel",),               # batch tiles independent
            vmem_limit_bytes=vmem_limit_bytes,
        ),
    )(xT, w1T, b1c, w2T, b2c, w3r, b3s)

    return outT[0, :B].reshape(B, 1)


def init_linear(key, fan_in, fan_out):
    """Deterministic init mimicking nn.Linear's U(-1/sqrt(fan_in), 1/sqrt(fan_in))."""
    kw, kb = jax.random.split(key)
    bound = 1.0 / jnp.sqrt(jnp.float32(fan_in))
    w = jax.random.uniform(kw, (fan_in, fan_out), jnp.float32, -bound, bound)
    b = jax.random.uniform(kb, (1, fan_out), jnp.float32, -bound, bound)
    return w, b


def make_params(key, input_dim):
    k1, k2, k3 = jax.random.split(key, 3)
    w1, b1 = init_linear(k1, input_dim, 64)
    w2, b2 = init_linear(k2, 64, 32)
    w3, b3 = init_linear(k3, 32, 1)
    return (w1, b1, w2, b2, w3, b3)


if __name__ == "__main__":
    key = jax.random.PRNGKey(0)
    k_params, k_x = jax.random.split(key)

    batch = 8
    input_dim = 16  # stand-in for X_train.shape[1] (dataset not available)

    params = make_params(k_params, input_dim)
    x = jax.random.normal(k_x, (batch, input_dim), jnp.float32)

    out = jax.block_until_ready(mlp_forward(x, params))
    assert out.shape == (batch, 1)

    w1, b1, w2, b2, w3, b3 = params

    # Matched-precision reference (bf16 matmul inputs, f32 accumulation) - tight check.
    xb, w1b, w2b = (a.astype(jnp.bfloat16) for a in (x, w1, w2))
    h1m = jnp.maximum(jnp.dot(xb, w1b, preferred_element_type=jnp.float32) + b1, 0.0)
    h2m = jnp.maximum(
        jnp.dot(h1m.astype(jnp.bfloat16), w2b, preferred_element_type=jnp.float32) + b2,
        0.0,
    )
    ref_matched = jnp.sum(h2m * w3.reshape(1, -1), axis=-1, keepdims=True) + b3
    assert jnp.allclose(out, ref_matched, atol=2e-3, rtol=2e-3)

    # Full-f32 reference (the PyTorch module's exact semantics) - loose check
    # that absorbs the bf16 cast error.
    h1f = jnp.maximum(x @ w1 + b1, 0.0)
    h2f = jnp.maximum(h1f @ w2 + b2, 0.0)
    ref_f32 = h2f @ w3 + b3
    assert jnp.allclose(out, ref_f32, atol=5e-2, rtol=5e-2)

    print("KERNEL_OK")
</pallas_src>

<mosaic_0001>
module attributes {stable_mosaic.version = 11 : i64} {
  func.func @mlp_kernel(%arg0: i32, %arg1: memref<16x128xbf16, #tpu.memory_space<vmem>>, %arg2: memref<64x16xbf16, #tpu.memory_space<vmem>>, %arg3: memref<64x1xf32, #tpu.memory_space<vmem>>, %arg4: memref<32x64xbf16, #tpu.memory_space<vmem>>, %arg5: memref<32x1xf32, #tpu.memory_space<vmem>>, %arg6: memref<1x32xf32, #tpu.memory_space<vmem>>, %arg7: memref<1xf32, #tpu.memory_space<smem>>, %arg8: memref<1x128xf32, #tpu.memory_space<vmem>>) attributes {dimension_semantics = [#tpu.dimension_semantics<parallel>], iteration_bounds = array<i64: 1>, scalar_prefetch = 0 : i64, scratch_operands = 0 : i64, tpu.core_type = #tpu.core_type<tc>, window_params = [{transform_indices = @transform_0, window_bounds = array<i64: 16, 128>}, {pipeline_mode = #tpu.pipeline_mode<synchronous>, transform_indices = @transform_1, window_bounds = array<i64: 64, 16>}, {pipeline_mode = #tpu.pipeline_mode<synchronous>, transform_indices = @transform_2, window_bounds = array<i64: 64, 1>}, {pipeline_mode = #tpu.pipeline_mode<synchronous>, transform_indices = @transform_3, window_bounds = array<i64: 32, 64>}, {pipeline_mode = #tpu.pipeline_mode<synchronous>, transform_indices = @transform_4, window_bounds = array<i64: 32, 1>}, {pipeline_mode = #tpu.pipeline_mode<synchronous>, transform_indices = @transform_5, window_bounds = array<i64: 1, 32>}, {transform_indices = @transform_6, window_bounds = array<i64: 1>}, {transform_indices = @transform_7, window_bounds = array<i64: 1, 128>}]} {
    %c0 = arith.constant 0 : index
    %c0_0 = arith.constant 0 : index
    %0 = vector.load %arg2[%c0, %c0_0] : memref<64x16xbf16, #tpu.memory_space<vmem>>, vector<64x16xbf16>
    %c0_1 = arith.constant 0 : index
    %c0_2 = arith.constant 0 : index
    %1 = vector.load %arg1[%c0_1, %c0_2] : memref<16x128xbf16, #tpu.memory_space<vmem>>, vector<16x128xbf16>
    %cst = arith.constant dense<0.000000e+00> : vector<64x128xf32>
    %2 = tpu.matmul %0, %1, %cst {dimension_numbers = #tpu.dot_dimension_numbers<[1], [0], [0], [1], [0, 0, 1, 1], [], []>} : vector<64x16xbf16>, vector<16x128xbf16>, vector<64x128xf32> -> vector<64x128xf32>
    %c0_3 = arith.constant 0 : index
    %c0_4 = arith.constant 0 : index
    %3 = vector.load %arg3[%c0_3, %c0_4] : memref<64x1xf32, #tpu.memory_space<vmem>>, vector<64x1xf32>
    %4 = vector.broadcast %3 : vector<64x1xf32> to vector<64x128xf32>
    %5 = arith.addf %2, %4 : vector<64x128xf32>
    %cst_5 = arith.constant 0.000000e+00 : f32
    %6 = vector.broadcast %cst_5 : f32 to vector<64x128xf32>
    %7 = arith.maximumf %5, %6 : vector<64x128xf32>
    %c0_6 = arith.constant 0 : index
    %c0_7 = arith.constant 0 : index
    %8 = vector.load %arg4[%c0_6, %c0_7] : memref<32x64xbf16, #tpu.memory_space<vmem>>, vector<32x64xbf16>
    %9 = arith.truncf %7 : vector<64x128xf32> to vector<64x128xbf16>
    %cst_8 = arith.constant dense<0.000000e+00> : vector<32x128xf32>
    %10 = tpu.matmul %8, %9, %cst_8 {dimension_numbers = #tpu.dot_dimension_numbers<[1], [0], [0], [1], [0, 0, 1, 1], [], []>} : vector<32x64xbf16>, vector<64x128xbf16>, vector<32x128xf32> -> vector<32x128xf32>
    %c0_9 = arith.constant 0 : index
    %c0_10 = arith.constant 0 : index
    %11 = vector.load %arg5[%c0_9, %c0_10] : memref<32x1xf32, #tpu.memory_space<vmem>>, vector<32x1xf32>
    %12 = vector.broadcast %11 : vector<32x1xf32> to vector<32x128xf32>
    %13 = arith.addf %10, %12 : vector<32x128xf32>
    %cst_11 = arith.constant 0.000000e+00 : f32
    %14 = vector.broadcast %cst_11 : f32 to vector<32x128xf32>
    %15 = arith.maximumf %13, %14 : vector<32x128xf32>
    %c0_12 = arith.constant 0 : index
    %c0_13 = arith.constant 0 : index
    %16 = vector.load %arg6[%c0_12, %c0_13] : memref<1x32xf32, #tpu.memory_space<vmem>>, vector<1x32xf32>
    %cst_14 = arith.constant dense<0.000000e+00> : vector<1x128xf32>
    %17 = tpu.matmul %16, %15, %cst_14 {dimension_numbers = #tpu.dot_dimension_numbers<[1], [0], [0], [1], [0, 0, 1, 1], [], []>} : vector<1x32xf32>, vector<32x128xf32>, vector<1x128xf32> -> vector<1x128xf32>
    %c0_15 = arith.constant 0 : index
    %18 = memref.load %arg7[%c0_15] : memref<1xf32, #tpu.memory_space<smem>>
    %19 = vector.broadcast %18 : f32 to vector<1x128xf32>
    %20 = arith.addf %17, %19 : vector<1x128xf32>
    %c0_16 = arith.constant 0 : index
    %c0_17 = arith.constant 0 : index
    %21 = vector.load %arg8[%c0_16, %c0_17] : memref<1x128xf32, #tpu.memory_space<vmem>>, vector<1x128xf32>
    tpu.vector_store %arg8[%c0_16, %c0_17], %20 {strides = array<i32>} : memref<1x128xf32, #tpu.memory_space<vmem>>, vector<1x128xf32>,
    return
  }
  func.func @transform_0(%arg0: i32) -> (i32, i32) {
    %c0_i32 = arith.constant 0 : i32
    %c0_i32_0 = arith.constant 0 : i32
    return %c0_i32, %arg0 : i32, i32
  }
  func.func @transform_1(%arg0: i32) -> (i32, i32) {
    %c0_i32 = arith.constant 0 : i32
    %c0_i32_0 = arith.constant 0 : i32
    %c0_i32_1 = arith.constant 0 : i32
    return %c0_i32, %c0_i32_0 : i32, i32
  }
  func.func @transform_2(%arg0: i32) -> (i32, i32) {
    %c0_i32 = arith.constant 0 : i32
    %c0_i32_0 = arith.constant 0 : i32
    %c0_i32_1 = arith.constant 0 : i32
    return %c0_i32, %c0_i32_0 : i32, i32
  }
  func.func @transform_3(%arg0: i32) -> (i32, i32) {
    %c0_i32 = arith.constant 0 : i32
    %c0_i32_0 = arith.constant 0 : i32
    %c0_i32_1 = arith.constant 0 : i32
    return %c0_i32, %c0_i32_0 : i32, i32
  }
  func.func @transform_4(%arg0: i32) -> (i32, i32) {
    %c0_i32 = arith.constant 0 : i32
    %c0_i32_0 = arith.constant 0 : i32
    %c0_i32_1 = arith.constant 0 : i32
    return %c0_i32, %c0_i32_0 : i32, i32
  }
  func.func @transform_5(%arg0: i32) -> (i32, i32) {
    %c0_i32 = arith.constant 0 : i32
    %c0_i32_0 = arith.constant 0 : i32
    %c0_i32_1 = arith.constant 0 : i32
    return %c0_i32, %c0_i32_0 : i32, i32
  }
  func.func @transform_6(%arg0: i32) -> i32 {
    %c0_i32 = arith.constant 0 : i32
    %c0_i32_0 = arith.constant 0 : i32
    return %c0_i32 : i32
  }
  func.func @transform_7(%arg0: i32) -> (i32, i32) {
    %c0_i32 = arith.constant 0 : i32
    %c0_i32_0 = arith.constant 0 : i32
    return %c0_i32, %arg0 : i32, i32
  }
}

</mosaic_0001>

<bundles_post_ra>
// kernel: tpu_custom_call.1
= control target key start
LH: loop header
LB: loop body
LE: loop exit
PB: predicated region body
PF: predicated region fallthrough
CT: control target
= control target key end

     0   :  { %vm113_vm0 = vcmask 130048   ;;  %v500_v3 = vmov 0   ;;  %s626_s0 = inlined_call_operand.vmem [shape: bf16[16,128], index: 0, kind: input, shape index: {}]   ;;  %s627_s1 = inlined_call_operand.vmem [shape: bf16[64,16], index: 1, kind: input, shape index: {}]   ;;  %s628_s2 = inlined_call_operand.vmem [shape: f32[64,1], index: 2, kind: input, shape index: {}]   ;;  %s629_s3 = inlined_call_operand.vmem [shape: bf16[32,64], index: 3, kind: input, shape index: {}]   ;;  %s630_s4 = inlined_call_operand.vmem [shape: f32[32,1], index: 4, kind: input, shape index: {}]   ;;  %s631_s5 = inlined_call_operand.vmem [shape: f32[1,32], index: 5, kind: input, shape index: {}]   ;;  %s632_s6 = inlined_call_operand.<no memory space> [shape: f32[1], index: 6, kind: input, shape index: {}]   ;;  %s633_s7 = inlined_call_operand.hbm [shape: f32[1,128], index: 7, kind: output, shape index: {}]  }
   0x1   :  { %v469_v0 = vld [vmem:[%s626_s0] sm:$0xff]   ;;  %v471_v2 = vld [vmem:[%s627_s1 + $0x8] sm:$0xff]   ;;  %467 = vset.pattern.permute.xlu0 %v500_v3  ;;  %v472_v4 = vld [vmem:[%s627_s1 + $0x10] sm:$0xff]   ;;  %468 = vset.pattern.permute.xlu1 %v500_v3 }
   0x2   :  { %v470_v1 = vld [vmem:[%s627_s1] sm:$0xff]   ;;  %423 = vmatprep.subr.bf16.mxu0 %v469_v0  ;;  %v41_v6 = vld [vmem:[%s628_s2 + $0x10] sm:$0xff]  ;;  %v40_v7 = vld [vmem:[%s628_s2 + $0x8] sm:$0xff] }
   0x3   :  { %424 = vmatpush3.bf16.msra.mxu0 %v469_v0  ;;  %425 = vmatprep.mubr.msk.bf16.mxu0 %vm113_vm0, %v470_v1  ;;  %v39_v5 = vld [vmem:[%s628_s2] sm:$0xff]  ;;  %v42_v8 = vld [vmem:[%s628_s2 + $0x18] sm:$0xff] }
   0x4   :  { %49 = vperm.xlu0 %467, %v39_v5   ;;  %59 = vperm.xlu1 %468, %v41_v6   ;;  %v473_v9 = vld [vmem:[%s627_s1 + $0x18] sm:$0xff]  }
   0x6   :  { %426 = vmatmul.mubr.msk.bf16.vlgmr.msra.gmra.mrb[0].mxu0 %vm113_vm0, %v471_v2 }
   0x7   :  { %429 = vmatprep.mubr.msk.bf16.mxu0 %vm113_vm0, %v472_v4 }
   0x8   :  { %54 = vperm.xlu0 %467, %v40_v7  }
   0x9   :  { %13 = vsyncpa [#allocation4], 0  ;;  %64 = vperm.xlu1 %468, %v42_v8   ;;  %v43_v10 = vld [vmem:[%s628_s2 + $0x20] sm:$0xff]  ;;  %v44_v11 = vld [vmem:[%s628_s2 + $0x28] sm:$0xff]  ;;  %vm241_vm1 = vcmask 523264   ;;  %v501_v56 = vmov 0.0|0.0  }
   0xa   :  { %v45_v12 = vld [vmem:[%s628_s2 + $0x30] sm:$0xff]  ;;  %v46_v13 = vld [vmem:[%s628_s2 + $0x38] sm:$0xff]  ;;  %v207_v14 = vld [vmem:[%s630_s4] sm:$0xff]  ;;  %456 = vmatprep.subr.bf16.mxu0 %v501_v56  ;;  %vm502_vm2 = vmmov 0   ;;  %v503_v57 = vmov 0.0   ;;  %vm304_vm3 = vcmask 261120  }
   0xb   :  { %v208_v15 = vld [vmem:[%s630_s4 + $0x8] sm:$0xff]  ;;  %v209_v16 = vld [vmem:[%s630_s4 + $0x10] sm:$0xff]  ;;  %v210_v17 = vld [vmem:[%s630_s4 + $0x18] sm:$0xff]  ;;  %s504_s14 = smov [#allocation3]  }
   0xc   :  { %69 = vperm.xlu0 %467, %v43_v10   ;;  %v474_v18 = vld [vmem:[%s629_s3] sm:$0xff]   ;;  %v475_v55 = vld [vmem:[%s629_s3 + $0x8] sm:$0xff]   ;;  %s385_s15 = sshll.u32 %s504_s14, 4  ;;  %s386_s15 = int_to_ptr.vmem [resolvable:$true] %s385_s15 }
   0xd   :  { %74 = vperm.xlu1 %468, %v44_v11   ;;  %441 = vmatprep.mubr.msk.bf16.mxu1 %vm241_vm1, %v474_v18  ;;  %s476_s16 = scalar_lea.vmem %s386_s15, 16  ;;  %s480_s17 = scalar_lea.vmem %s386_s15, 32 }
   0xe   :  { %430 = vmatmul.mubr.msk.bf16.gmra.mrb[4].mxu0 %vm113_vm0, %v473_v9  ;;  %p477_p0 = scmp.ne.s32.totalorder %s386_s15, %s476_s16  ;;  %p481_p1 = scmp.lt.s32.totalorder %s386_s15, %s386_s15 }
   0xf   :  { %453 = vmatprep.mubr.msk.f32.mxu0 %vm502_vm2, %v503_v57  ;;  %p482_p2 = scmp.lt.s32.totalorder %s480_s17, %s476_s16 }
  0x10   :  { %79 = vperm.xlu0 %467, %v45_v12   ;;  %v301_v12 = vld [vmem:[%s631_s5] sm:$0x1] }
  0x11   :  { %84 = vperm.xlu1 %468, %v46_v13   ;;  %v303_v13 = vstv %s632_s6  ;;  %p483_p3 = por %p482_p2, %p481_p1 }
  0x13   :  { %p484_p4 = pnand %p483_p3, %p477_p0 }
  0x14   :  { %213 = vperm.xlu0 %467, %v207_v14  }
  0x15   :  { %218 = vperm.xlu1 %468, %v208_v15  }
  0x18   :  { %223 = vperm.xlu0 %467, %v209_v16  }
  0x19   :  { %228 = vperm.xlu1 %468, %v210_v17  }
  0x83   :  { %v50_v19 = vpop.permute.xlu0 %49  ;;  %v60_v20 = vpop.permute.xlu1 %59 }
  0x87   :  { %v55_v21 = vpop.permute.xlu0 %54 }
  0x88   :  { %v65_v22 = vpop.permute.xlu1 %64 }
  0x8b   :  { %v70_v26 = vpop.permute.xlu0 %69 }
  0x8c   :  { %v75_v31 = vpop.permute.xlu1 %74 }
  0x8f   :  { %v80_v38 = vpop.permute.xlu0 %79 }
  0x90   :  { %v85_v43 = vpop.permute.xlu1 %84 }
  0x93   :  { %v214_v58 = vpop.permute.xlu0 %213 }
  0x94   :  { %v219_v59 = vpop.permute.xlu1 %218 }
  0x97   :  { %v224_v60 = vpop.permute.xlu0 %223 }
  0x98   :  { %v229_v0 = vpop.permute.xlu1 %228 }
  0xd9   :  { %v427_v23 = vpop.f32.mrb[0].mxu0 }
  0xda   :  { %v169_v24 = vadd.f32 %v427_v23, %v60_v20  ;;  %v160_v25 = vpop.f32.mrb[1].mxu0 }
  0xdb   :  { %v161_v27 = vadd.f32 %v160_v25, %v50_v19  ;;  %v428_v28 = vpop.f32.mrb[2].mxu0 }
  0xdc   :  { %v172_v29 = vadd.f32 %v428_v28, %v65_v22  ;;  %v163_v30 = vpop.f32.mrb[3].mxu0  ;;  %v193_v33 = vmax.f32 %v169_v24, 0.0 }
  0xdd   :  { %v164_v32 = vadd.f32 %v163_v30, %v55_v21  ;;  %v191_v35 = vmax.f32 %v161_v27, 0.0 }
  0xde   :  { %v194_v34 = vmax.f32 %v172_v29, 0.0 }
  0xdf   :  { %v192_v36 = vmax.f32 %v164_v32, 0.0 }
  0xe0   :  { %v204_v37 = vpack.c.bf16 %v194_v34, %v193_v33 }
  0xe1   :  { %v431_v39 = vpop.f32.mrb[4].mxu0  ;;  %v203_v40 = vpack.c.bf16 %v192_v36, %v191_v35 }
  0xe2   :  { %v185_v41 = vadd.f32 %v431_v39, %v80_v38  ;;  %v176_v42 = vpop.f32.mrb[5].mxu0 }
  0xe3   :  { %v177_v44 = vadd.f32 %v176_v42, %v70_v26  ;;  %v432_v45 = vpop.f32.mrb[6].mxu0  ;;  %433 = vmatprep.subr.bf16.mxu1 %v203_v40 }
  0xe4   :  { %v188_v46 = vadd.f32 %v432_v45, %v85_v43  ;;  %v179_v47 = vpop.f32.mrb[7].mxu0  ;;  %434 = vmatpush3.bf16.msra.mxu1 %v203_v40  ;;  %v197_v49 = vmax.f32 %v185_v41, 0.0 }
  0xe5   :  { %v180_v48 = vadd.f32 %v179_v47, %v75_v31  ;;  %435 = vmatprep.subr.bf16.mxu1 %v204_v37  ;;  %v195_v51 = vmax.f32 %v177_v44, 0.0 }
  0xe6   :  { %v198_v50 = vmax.f32 %v188_v46, 0.0 }
  0xe7   :  { %v196_v52 = vmax.f32 %v180_v48, 0.0 }
  0xe8   :  { %v206_v53 = vpack.c.bf16 %v198_v50, %v197_v49  ;;  %436 = vmatpush3.bf16.msra.mxu1 %v204_v37 }
  0xe9   :  { %v205_v54 = vpack.c.bf16 %v196_v52, %v195_v51 }
  0xeb   :  { %437 = vmatprep.subr.bf16.mxu1 %v205_v54 }
  0xec   :  { %438 = vmatpush3.bf16.msra.mxu1 %v205_v54 }
  0xed   :  { %439 = vmatprep.subr.bf16.mxu1 %v206_v53 }
  0xf0   :  { %440 = vmatpush3.bf16.msra.mxu1 %v206_v53 }
  0xf3   :  { %442 = vmatmul.mubr.msk.bf16.vlgmr.msra.gmra.mrb[0].mxu1 %vm241_vm1, %v475_v55 }
 0x1c6   :  { %v443_v61 = vpop.f32.mrb[0].mxu1 }
 0x1c7   :  { %v291_v62 = vadd.f32 %v443_v61, %v224_v60  ;;  %v282_v63 = vpop.f32.mrb[1].mxu1 }
 0x1c8   :  { %v283_v1 = vadd.f32 %v282_v63, %v214_v58  ;;  %v444_v2 = vpop.f32.mrb[2].mxu1 }
 0x1c9   :  { %v294_v3 = vadd.f32 %v444_v2, %v229_v0  ;;  %v285_v4 = vpop.f32.mrb[3].mxu1  ;;  %v299_v6 = vmax.f32 %v291_v62, 0.0 }
 0x1ca   :  { %v286_v5 = vadd.f32 %v285_v4, %v219_v59  ;;  %v297_v8 = vmax.f32 %v283_v1, 0.0 }
 0x1cb   :  { %v300_v7 = vmax.f32 %v294_v3, 0.0 }
 0x1cc   :  { %v298_v9 = vmax.f32 %v286_v5, 0.0 }
 0x1cd   :  { %v460_v10 = vpack.c.bf16 %v300_v7, %v299_v6 }
 0x1ce   :  { %v457_v11 = vpack.c.bf16 %v298_v9, %v297_v8 }
 0x1d0   :  { %458 = vmatpush3.bf16.msra.mxu0 %v457_v11 }
 0x1d1   :  { %459 = vmatprep.subr.bf16.mxu0 %v501_v56 }
 0x1d4   :  { %461 = vmatpush3.bf16.msra.mxu0 %v460_v10 }
 0x1d7   :  { %454 = vmatmul.mubr.msk.f32.vlgmr.msra.gmra.mrb[8].mxu0 %vm304_vm3, %v301_v12 }
 0x2aa   :  { %v374_v14 = vpop.f32.mrb[8].mxu0 }
 0x2ab   :  { %v375_v15 = vadd.f32 %v374_v14, %v303_v13  ;;  %v455_v16 = vpop.f32.mrb[9].mxu0 }
 0x2ad   :  { %378 = vst [vmem:[#allocation3] sm:$0x1] %v375_v15 }
 0x2ae   :  { %487 = shalt.err (!%p484_p4)
}
 0x2af   :  { %s488_s19 = scalar_lea.hbm %s633_s7, 16 }
 0x2b0   :  { %p489_p5 = scmp.ne.s32.totalorder %s633_s7, %s488_s19  ;;  %p492_p6 = scmp.lt.u32.totalorder %s488_s19, %s633_s7 }
 0x2b2   :  { %p494_p7 = pnand %p492_p6, %p489_p5 }
 0x2b4   :  { %497 = shalt.err (!%p494_p7)
}
 0x2b5   :  { %388 = dma.vmem_to_hbm [thread:$0]  %s386_s15, 16, %s633_s7, [#allocation4]  }
 0x2b6   :  { %498 = dma.done.wait [#allocation4], 16  }
 0x2b7   :  { %499 = vsyncadd [#allocation4], 4294967280 }
 0x2b8   :  { %392 = vsyncpa [#allocation4], 1 }

</bundles_post_ra>
